<compile_context>
chip_gen: v7x
topology: tpu7x:2x2x1
jax: 0.10.0
libtpu: 0.0.40
codegen_flags: <defaults>
</compile_context>

<pallas_src>
import functools

import jax
import jax.numpy as jnp
from jax.experimental import pallas as pl
from jax.experimental.pallas import tpu as pltpu


def _resnet_block_kernel(x_ref, w1_ref, b1_ref, w2_ref, b2_ref, o_ref, *, img_h):
    # x_ref : (M, WC)      bf16 input block; M = (images per step) * H, lane-dense W*C
    # w*_ref: (3, WC, WC)  bf16 banded im2col weights (one (WC,WC) band per dh)
    # b*_ref: (1, WC)      f32 bias tiled across W
    # o_ref : (M, WC)      f32 output block
    M, WC = x_ref.shape

    x = x_ref[...]                      # bf16, feeds the MXU
    x_f32 = x.astype(jnp.float32)       # f32 residual

    # Row masks for the +/-1 row (dh) shifts: zero the rows that would read
    # across an image boundary (or wrap around the stacked block).  Static.
    row = jax.lax.broadcasted_iota(jnp.int32, (M, WC), 0)
    keep_dn = (row % img_h) != 0             # rows where the dh=0 (shift-down) term is valid
    keep_up = (row % img_h) != (img_h - 1)   # rows where the dh=2 (shift-up)   term is valid

    def conv(v, w_ref, b_ref):
        # out[h] = v[h-1] @ band0 + v[h] @ band1 + v[h+1] @ band2 + bias,
        # realised as three K=WC matmuls on the unshifted v followed by +/-1
        # sublane rolls (XLU) + masked adds -- no halo scratch, no lane concat,
        # no sublane-unaligned stores.
        r0 = jnp.dot(v, w_ref[0], preferred_element_type=jnp.float32)
        r1 = jnp.dot(v, w_ref[1], preferred_element_type=jnp.float32)
        r2 = jnp.dot(v, w_ref[2], preferred_element_type=jnp.float32)
        acc = r1 + b_ref[...]
        acc = acc + jnp.where(keep_dn, pltpu.roll(r0, shift=1, axis=0), 0.0)
        acc = acc + jnp.where(keep_up, pltpu.roll(r2, shift=M - 1, axis=0), 0.0)
        return acc

    # conv1 + bias + ReLU  (f32 accumulate; bf16 for the second MXU pass)
    y = jnp.maximum(conv(x, w1_ref, b1_ref), 0.0)

    # conv2 + bias + residual + ReLU  (residual add in f32)
    out = jnp.maximum(conv(y.astype(x.dtype), w2_ref, b2_ref) + x_f32, 0.0)
    o_ref[...] = out.astype(o_ref.dtype)   # full-lane unmasked store


def _fold_conv_weight(w_hwio, W):
    """(3, 3, C, C) HWIO -> (3, W*C, W*C) banded matrices (one per dh).

    band_dh[w*C + ci, w'*C + co] = K[dh, dw, ci, co] with w' = w + 1 - dw, so the
    dw taps (and the zero padding at the W edges) are absorbed into the matmul;
    only the +/-1 dh row shifts remain in the kernel (done via pltpu.roll).
    """
    C = w_hwio.shape[2]
    dtype = w_hwio.dtype
    bands = []
    for dh in range(3):
        band = jnp.zeros((W * C, W * C), dtype)
        for dw in range(3):
            shift = jnp.eye(W, W, k=1 - dw, dtype=dtype)  # S[w, w'] = 1 iff w' = w + 1 - dw
            band = band + jnp.kron(shift, w_hwio[dh, dw])
        bands.append(band)
    return jnp.stack(bands, axis=0)                        # (3, W*C, W*C)


def _steps_for_device(n_images):
    """Grid steps: 2 on dual-TensorCore chips (v7x) so both cores get work,
    otherwise 1 (fold the whole batch into the matmul M dimension)."""
    try:
        kind = jax.devices()[0].device_kind.lower().replace(" ", "")
    except Exception:
        kind = ""
    dual_tc = ("v7" in kind) or ("tpu7" in kind)
    if dual_tc and n_images % 2 == 0:
        return 2
    return 1


def resnet_block_nhwc(x_nhwc, w1, b1, w2, b2, *, compute_dtype=jnp.bfloat16):
    N, H, W, C = x_nhwc.shape
    WC = W * C

    # Lane-dense fold: (N, H, W, C) -> (N*H, W*C); contiguous, free reshape.
    x2 = x_nhwc.reshape(N * H, WC).astype(compute_dtype)

    # Would normally be done once at parameter-init time.
    # VMEM note: each folded weight is 3*(W*C)^2 * itemsize bytes and is
    # double-buffered by the pipeline; at much larger W*C switch to per-dw
    # (C, C) taps (K = 9*C im2col) or pipeline_mode=pl.Buffered(1).
    w1f = _fold_conv_weight(w1, W).astype(compute_dtype)
    w2f = _fold_conv_weight(w2, W).astype(compute_dtype)
    b1f = jnp.tile(b1, W).reshape(1, WC).astype(jnp.float32)
    b2f = jnp.tile(b2, W).reshape(1, WC).astype(jnp.float32)

    n_steps = _steps_for_device(N)
    M = (N // n_steps) * H              # rows per grid step (batch folded into M)

    kernel = functools.partial(_resnet_block_kernel, img_h=H)
    grid_spec = pltpu.PrefetchScalarGridSpec(
        num_scalar_prefetch=0,
        grid=(n_steps,),
        in_specs=[
            pl.BlockSpec((M, WC), lambda n: (n, 0)),
            pl.BlockSpec((3, WC, WC), lambda n: (0, 0, 0)),
            pl.BlockSpec((1, WC), lambda n: (0, 0)),
            pl.BlockSpec((3, WC, WC), lambda n: (0, 0, 0)),
            pl.BlockSpec((1, WC), lambda n: (0, 0)),
        ],
        out_specs=pl.BlockSpec((M, WC), lambda n: (n, 0)),
    )
    out = pl.pallas_call(
        kernel,
        out_shape=jax.ShapeDtypeStruct((N * H, WC), jnp.float32),
        grid_spec=grid_spec,
        compiler_params=pltpu.CompilerParams(
            dimension_semantics=("parallel",)),
    )(x2, w1f, b1f, w2f, b2f)
    return out.reshape(N, H, W, C).astype(x_nhwc.dtype)


def resnet_block(x_nchw, w1, b1, w2, b2):
    """PyTorch-facing wrapper: NCHW in, NCHW out (matches ResNetBlock.forward)."""
    # TODO(synk): if the surrounding model can stay NHWC end-to-end, call
    # resnet_block_nhwc directly and drop this transpose pair (each transpose
    # costs about as much as the fused kernel at this problem size).
    x_nhwc = jnp.transpose(x_nchw, (0, 2, 3, 1))
    y = resnet_block_nhwc(x_nhwc, w1, b1, w2, b2)
    return jnp.transpose(y, (0, 3, 1, 2))


def _reference(x_nchw, w1, b1, w2, b2):
    """Pure-JAX f32 reference for numerical verification."""
    x = jnp.transpose(x_nchw, (0, 2, 3, 1))
    dn = jax.lax.conv_dimension_numbers(x.shape, w1.shape,
                                        ('NHWC', 'HWIO', 'NHWC'))

    def conv(v, w, b):
        return jax.lax.conv_general_dilated(
            v, w, window_strides=(1, 1), padding='SAME',
            dimension_numbers=dn,
            precision=jax.lax.Precision.HIGHEST) + b.reshape(1, 1, 1, -1)

    y = jax.nn.relu(conv(x, w1, b1))
    y = jax.nn.relu(conv(y, w2, b2) + x)
    return jnp.transpose(y, (0, 3, 1, 2))


if __name__ == "__main__":
    # Shapes consistent with the module: N=2, n_features=8, 16x16 spatial
    # (W*C = 128 so the folded last dim is exactly one lane width).
    N, C, H, W = 2, 8, 16, 16
    key = jax.random.PRNGKey(0)
    kx, kw1, kb1, kw2, kb2 = jax.random.split(key, 5)

    x = jax.random.normal(kx, (N, C, H, W), jnp.float32)          # NCHW, like PyTorch
    w1 = jax.random.normal(kw1, (3, 3, C, C), jnp.float32) * 0.1  # HWIO
    b1 = jax.random.normal(kb1, (C,), jnp.float32) * 0.1
    w2 = jax.random.normal(kw2, (3, 3, C, C), jnp.float32) * 0.1
    b2 = jax.random.normal(kb2, (C,), jnp.float32) * 0.1

    fwd = jax.jit(resnet_block)
    out = jax.block_until_ready(fwd(x, w1, b1, w2, b2))
    ref = jax.block_until_ready(_reference(x, w1, b1, w2, b2))

    assert out.shape == (N, C, H, W), out.shape
    max_err = float(jnp.max(jnp.abs(out - ref)))
    # bf16 operands vs f32 HIGHEST reference -> loosened tolerance.
    assert jnp.allclose(out, ref, atol=5e-2, rtol=5e-2), f"max_err={max_err}"

    print("KERNEL_OK")
</pallas_src>

<mosaic_0001>
module attributes {stable_mosaic.version = 11 : i64} {
  func.func @_resnet_block_kernel(%arg0: i32, %arg1: memref<32x128xbf16, #tpu.memory_space<vmem>>, %arg2: memref<3x128x128xbf16, #tpu.memory_space<vmem>>, %arg3: memref<1x128xf32, #tpu.memory_space<vmem>>, %arg4: memref<3x128x128xbf16, #tpu.memory_space<vmem>>, %arg5: memref<1x128xf32, #tpu.memory_space<vmem>>, %arg6: memref<32x128xf32, #tpu.memory_space<vmem>>) attributes {dimension_semantics = [#tpu.dimension_semantics<parallel>], iteration_bounds = array<i64: 1>, scalar_prefetch = 0 : i64, scratch_operands = 0 : i64, tpu.core_type = #tpu.core_type<tc>, window_params = [{transform_indices = @transform_0, window_bounds = array<i64: 32, 128>}, {pipeline_mode = #tpu.pipeline_mode<synchronous>, transform_indices = @transform_1, window_bounds = array<i64: 3, 128, 128>}, {pipeline_mode = #tpu.pipeline_mode<synchronous>, transform_indices = @transform_2, window_bounds = array<i64: 1, 128>}, {pipeline_mode = #tpu.pipeline_mode<synchronous>, transform_indices = @transform_3, window_bounds = array<i64: 3, 128, 128>}, {pipeline_mode = #tpu.pipeline_mode<synchronous>, transform_indices = @transform_4, window_bounds = array<i64: 1, 128>}, {transform_indices = @transform_5, window_bounds = array<i64: 32, 128>}]} {
    %c0 = arith.constant 0 : index
    %c0_0 = arith.constant 0 : index
    %0 = vector.load %arg1[%c0, %c0_0] : memref<32x128xbf16, #tpu.memory_space<vmem>>, vector<32x128xbf16>
    %1 = arith.extf %0 : vector<32x128xbf16> to vector<32x128xf32>
    %2 = tpu.iota {dimensions = array<i32: 0>} : vector<32x128xi32>
    %c16_i32 = arith.constant 16 : i32
    %c0_i32 = arith.constant 0 : i32
    %3 = arith.cmpi eq, %c16_i32, %c0_i32 : i32
    %c1_i32 = arith.constant 1 : i32
    %4 = arith.select %3, %c1_i32, %c16_i32 : i32
    %5 = vector.broadcast %4 : i32 to vector<32x128xi32>
    %6 = arith.remsi %2, %5 : vector<32x128xi32>
    %c0_i32_1 = arith.constant 0 : i32
    %7 = vector.broadcast %c0_i32_1 : i32 to vector<32x128xi32>
    %8 = arith.cmpi ne, %6, %7 : vector<32x128xi32>
    %c0_i32_2 = arith.constant 0 : i32
    %9 = vector.broadcast %c0_i32_2 : i32 to vector<32x128xi32>
    %10 = arith.cmpi slt, %6, %9 : vector<32x128xi32>
    %c0_i32_3 = arith.constant 0 : i32
    %11 = arith.cmpi slt, %4, %c0_i32_3 : i32
    %12 = vector.broadcast %11 : i1 to vector<32x128xi1>
    %13 = vector.broadcast %12 : vector<32x128xi1> to vector<32x128xi1>
    %14 = arith.xori %10, %13 : vector<32x128xi1>
    %15 = arith.andi %14, %8 : vector<32x128xi1>
    %16 = vector.broadcast %4 : i32 to vector<32x128xi32>
    %17 = arith.addi %6, %16 : vector<32x128xi32>
    %18 = arith.select %15, %17, %6 : vector<32x128xi1>, vector<32x128xi32>
    %c0_i32_4 = arith.constant 0 : i32
    %19 = vector.broadcast %c0_i32_4 : i32 to vector<32x128xi32>
    %20 = arith.cmpi ne, %18, %19 : vector<32x128xi32>
    %c16_i32_5 = arith.constant 16 : i32
    %c0_i32_6 = arith.constant 0 : i32
    %21 = arith.cmpi eq, %c16_i32_5, %c0_i32_6 : i32
    %c1_i32_7 = arith.constant 1 : i32
    %22 = arith.select %21, %c1_i32_7, %c16_i32_5 : i32
    %23 = vector.broadcast %22 : i32 to vector<32x128xi32>
    %24 = arith.remsi %2, %23 : vector<32x128xi32>
    %c0_i32_8 = arith.constant 0 : i32
    %25 = vector.broadcast %c0_i32_8 : i32 to vector<32x128xi32>
    %26 = arith.cmpi ne, %24, %25 : vector<32x128xi32>
    %c0_i32_9 = arith.constant 0 : i32
    %27 = vector.broadcast %c0_i32_9 : i32 to vector<32x128xi32>
    %28 = arith.cmpi slt, %24, %27 : vector<32x128xi32>
    %c0_i32_10 = arith.constant 0 : i32
    %29 = arith.cmpi slt, %22, %c0_i32_10 : i32
    %30 = vector.broadcast %29 : i1 to vector<32x128xi1>
    %31 = vector.broadcast %30 : vector<32x128xi1> to vector<32x128xi1>
    %32 = arith.xori %28, %31 : vector<32x128xi1>
    %33 = arith.andi %32, %26 : vector<32x128xi1>
    %34 = vector.broadcast %22 : i32 to vector<32x128xi32>
    %35 = arith.addi %24, %34 : vector<32x128xi32>
    %36 = arith.select %33, %35, %24 : vector<32x128xi1>, vector<32x128xi32>
    %c15_i32 = arith.constant 15 : i32
    %37 = vector.broadcast %c15_i32 : i32 to vector<32x128xi32>
    %38 = arith.cmpi ne, %36, %37 : vector<32x128xi32>
    %c0_11 = arith.constant 0 : index
    %c0_12 = arith.constant 0 : index
    %c0_13 = arith.constant 0 : index
    %39 = vector.load %arg2[%c0_11, %c0_12, %c0_13] : memref<3x128x128xbf16, #tpu.memory_space<vmem>>, vector<1x128x128xbf16>
    %40 = vector.shape_cast %39 : vector<1x128x128xbf16> to vector<128x128xbf16>
    %cst = arith.constant dense<0.000000e+00> : vector<32x128xf32>
    %41 = tpu.matmul %0, %40, %cst {dimension_numbers = #tpu.dot_dimension_numbers<[1], [0], [0], [1], [0, 0, 1, 1], [], []>} : vector<32x128xbf16>, vector<128x128xbf16>, vector<32x128xf32> -> vector<32x128xf32>
    %c1 = arith.constant 1 : index
    %c0_14 = arith.constant 0 : index
    %c0_15 = arith.constant 0 : index
    %42 = vector.load %arg2[%c1, %c0_14, %c0_15] : memref<3x128x128xbf16, #tpu.memory_space<vmem>>, vector<1x128x128xbf16>
    %43 = vector.shape_cast %42 : vector<1x128x128xbf16> to vector<128x128xbf16>
    %cst_16 = arith.constant dense<0.000000e+00> : vector<32x128xf32>
    %44 = tpu.matmul %0, %43, %cst_16 {dimension_numbers = #tpu.dot_dimension_numbers<[1], [0], [0], [1], [0, 0, 1, 1], [], []>} : vector<32x128xbf16>, vector<128x128xbf16>, vector<32x128xf32> -> vector<32x128xf32>
    %c2 = arith.constant 2 : index
    %c0_17 = arith.constant 0 : index
    %c0_18 = arith.constant 0 : index
    %45 = vector.load %arg2[%c2, %c0_17, %c0_18] : memref<3x128x128xbf16, #tpu.memory_space<vmem>>, vector<1x128x128xbf16>
    %46 = vector.shape_cast %45 : vector<1x128x128xbf16> to vector<128x128xbf16>
    %cst_19 = arith.constant dense<0.000000e+00> : vector<32x128xf32>
    %47 = tpu.matmul %0, %46, %cst_19 {dimension_numbers = #tpu.dot_dimension_numbers<[1], [0], [0], [1], [0, 0, 1, 1], [], []>} : vector<32x128xbf16>, vector<128x128xbf16>, vector<32x128xf32> -> vector<32x128xf32>
    %c0_20 = arith.constant 0 : index
    %c0_21 = arith.constant 0 : index
    %48 = vector.load %arg3[%c0_20, %c0_21] : memref<1x128xf32, #tpu.memory_space<vmem>>, vector<1x128xf32>
    %49 = vector.broadcast %48 : vector<1x128xf32> to vector<32x128xf32>
    %50 = arith.addf %44, %49 : vector<32x128xf32>
    %c1_i32_22 = arith.constant 1 : i32
    %51 = tpu.dynamic_rotate %41 by %c1_i32_22 dim 0 : vector<32x128xf32>, i32 -> vector<32x128xf32>
    %cst_23 = arith.constant 0.000000e+00 : f32
    %52 = vector.broadcast %cst_23 : f32 to vector<32x128xf32>
    %53 = arith.select %20, %51, %52 : vector<32x128xi1>, vector<32x128xf32>
    %54 = arith.addf %50, %53 : vector<32x128xf32>
    %c31_i32 = arith.constant 31 : i32
    %55 = tpu.dynamic_rotate %47 by %c31_i32 dim 0 : vector<32x128xf32>, i32 -> vector<32x128xf32>
    %cst_24 = arith.constant 0.000000e+00 : f32
    %56 = vector.broadcast %cst_24 : f32 to vector<32x128xf32>
    %57 = arith.select %38, %55, %56 : vector<32x128xi1>, vector<32x128xf32>
    %58 = arith.addf %54, %57 : vector<32x128xf32>
    %cst_25 = arith.constant 0.000000e+00 : f32
    %59 = vector.broadcast %cst_25 : f32 to vector<32x128xf32>
    %60 = arith.maximumf %58, %59 : vector<32x128xf32>
    %61 = arith.truncf %60 : vector<32x128xf32> to vector<32x128xbf16>
    %c0_26 = arith.constant 0 : index
    %c0_27 = arith.constant 0 : index
    %c0_28 = arith.constant 0 : index
    %62 = vector.load %arg4[%c0_26, %c0_27, %c0_28] : memref<3x128x128xbf16, #tpu.memory_space<vmem>>, vector<1x128x128xbf16>
    %63 = vector.shape_cast %62 : vector<1x128x128xbf16> to vector<128x128xbf16>
    %cst_29 = arith.constant dense<0.000000e+00> : vector<32x128xf32>
    %64 = tpu.matmul %61, %63, %cst_29 {dimension_numbers = #tpu.dot_dimension_numbers<[1], [0], [0], [1], [0, 0, 1, 1], [], []>} : vector<32x128xbf16>, vector<128x128xbf16>, vector<32x128xf32> -> vector<32x128xf32>
    %c1_30 = arith.constant 1 : index
    %c0_31 = arith.constant 0 : index
    %c0_32 = arith.constant 0 : index
    %65 = vector.load %arg4[%c1_30, %c0_31, %c0_32] : memref<3x128x128xbf16, #tpu.memory_space<vmem>>, vector<1x128x128xbf16>
    %66 = vector.shape_cast %65 : vector<1x128x128xbf16> to vector<128x128xbf16>
    %cst_33 = arith.constant dense<0.000000e+00> : vector<32x128xf32>
    %67 = tpu.matmul %61, %66, %cst_33 {dimension_numbers = #tpu.dot_dimension_numbers<[1], [0], [0], [1], [0, 0, 1, 1], [], []>} : vector<32x128xbf16>, vector<128x128xbf16>, vector<32x128xf32> -> vector<32x128xf32>
    %c2_34 = arith.constant 2 : index
    %c0_35 = arith.constant 0 : index
    %c0_36 = arith.constant 0 : index
    %68 = vector.load %arg4[%c2_34, %c0_35, %c0_36] : memref<3x128x128xbf16, #tpu.memory_space<vmem>>, vector<1x128x128xbf16>
    %69 = vector.shape_cast %68 : vector<1x128x128xbf16> to vector<128x128xbf16>
    %cst_37 = arith.constant dense<0.000000e+00> : vector<32x128xf32>
    %70 = tpu.matmul %61, %69, %cst_37 {dimension_numbers = #tpu.dot_dimension_numbers<[1], [0], [0], [1], [0, 0, 1, 1], [], []>} : vector<32x128xbf16>, vector<128x128xbf16>, vector<32x128xf32> -> vector<32x128xf32>
    %c0_38 = arith.constant 0 : index
    %c0_39 = arith.constant 0 : index
    %71 = vector.load %arg5[%c0_38, %c0_39] : memref<1x128xf32, #tpu.memory_space<vmem>>, vector<1x128xf32>
    %72 = vector.broadcast %71 : vector<1x128xf32> to vector<32x128xf32>
    %73 = arith.addf %67, %72 : vector<32x128xf32>
    %c1_i32_40 = arith.constant 1 : i32
    %74 = tpu.dynamic_rotate %64 by %c1_i32_40 dim 0 : vector<32x128xf32>, i32 -> vector<32x128xf32>
    %cst_41 = arith.constant 0.000000e+00 : f32
    %75 = vector.broadcast %cst_41 : f32 to vector<32x128xf32>
    %76 = arith.select %20, %74, %75 : vector<32x128xi1>, vector<32x128xf32>
    %77 = arith.addf %73, %76 : vector<32x128xf32>
    %c31_i32_42 = arith.constant 31 : i32
    %78 = tpu.dynamic_rotate %70 by %c31_i32_42 dim 0 : vector<32x128xf32>, i32 -> vector<32x128xf32>
    %cst_43 = arith.constant 0.000000e+00 : f32
    %79 = vector.broadcast %cst_43 : f32 to vector<32x128xf32>
    %80 = arith.select %38, %78, %79 : vector<32x128xi1>, vector<32x128xf32>
    %81 = arith.addf %77, %80 : vector<32x128xf32>
    %82 = arith.addf %81, %1 : vector<32x128xf32>
    %cst_44 = arith.constant 0.000000e+00 : f32
    %83 = vector.broadcast %cst_44 : f32 to vector<32x128xf32>
    %84 = arith.maximumf %82, %83 : vector<32x128xf32>
    %c0_45 = arith.constant 0 : index
    %c0_46 = arith.constant 0 : index
    %85 = vector.load %arg6[%c0_45, %c0_46] : memref<32x128xf32, #tpu.memory_space<vmem>>, vector<32x128xf32>
    tpu.vector_store %arg6[%c0_45, %c0_46], %84 {strides = array<i32>} : memref<32x128xf32, #tpu.memory_space<vmem>>, vector<32x128xf32>,
    return
  }
  func.func @transform_0(%arg0: i32) -> (i32, i32) {
    %c0_i32 = arith.constant 0 : i32
    %c0_i32_0 = arith.constant 0 : i32
    return %arg0, %c0_i32 : i32, i32
  }
  func.func @transform_1(%arg0: i32) -> (i32, i32, i32) {
    %c0_i32 = arith.constant 0 : i32
    %c0_i32_0 = arith.constant 0 : i32
    %c0_i32_1 = arith.constant 0 : i32
    %c0_i32_2 = arith.constant 0 : i32
    return %c0_i32, %c0_i32_0, %c0_i32_1 : i32, i32, i32
  }
  func.func @transform_2(%arg0: i32) -> (i32, i32) {
    %c0_i32 = arith.constant 0 : i32
    %c0_i32_0 = arith.constant 0 : i32
    %c0_i32_1 = arith.constant 0 : i32
    return %c0_i32, %c0_i32_0 : i32, i32
  }
  func.func @transform_3(%arg0: i32) -> (i32, i32, i32) {
    %c0_i32 = arith.constant 0 : i32
    %c0_i32_0 = arith.constant 0 : i32
    %c0_i32_1 = arith.constant 0 : i32
    %c0_i32_2 = arith.constant 0 : i32
    return %c0_i32, %c0_i32_0, %c0_i32_1 : i32, i32, i32
  }
  func.func @transform_4(%arg0: i32) -> (i32, i32) {
    %c0_i32 = arith.constant 0 : i32
    %c0_i32_0 = arith.constant 0 : i32
    %c0_i32_1 = arith.constant 0 : i32
    return %c0_i32, %c0_i32_0 : i32, i32
  }
  func.func @transform_5(%arg0: i32) -> (i32, i32) {
    %c0_i32 = arith.constant 0 : i32
    %c0_i32_0 = arith.constant 0 : i32
    return %arg0, %c0_i32 : i32, i32
  }
}

</mosaic_0001>

<bundles_post_ra>
// kernel: tile.13
= control target key start
LH: loop header
LB: loop body
LE: loop exit
PB: predicated region body
PF: predicated region fallthrough
CT: control target
= control target key end

     0   :  { %s28_s0 = inlined_call_operand.vmem [shape: f32[8], index: 0, kind: input, shape index: {}]   ;;  %s29_s1 = inlined_call_operand.vmem [shape: f32[16,8], index: 1, kind: output, shape index: {}]  }
   0x1   :  { %v4_v0 = vld [vmem:[%s28_s0] ss:$0 sm:$0xff] }
   0x2   :  { %5 = vst [vmem:[%s29_s1] sm:$0xff] %v4_v0  ;;  %8 = vst [vmem:[%s29_s1 + $0x8] sm:$0xff] %v4_v0 }

// kernel: tile.14
= control target key start
LH: loop header
LB: loop body
LE: loop exit
PB: predicated region body
PF: predicated region fallthrough
CT: control target
= control target key end

     0   :  { %s131_s10 = smov 120   ;;  %s132_s11 = smov 104   ;;  %vm3_vm0 = vcmask 64512   ;;  %vm9_vm1 = vcmask 1048512   ;;  %vm15_vm2 = vcmask 982912   ;;  %vm21_vm3 = vcmask 917312   ;;  %s207_s0 = inlined_call_operand.vmem [shape: f32[16,8], index: 0, kind: input, shape index: {}]   ;;  %s208_s1 = inlined_call_operand.vmem [shape: f32[1,128], index: 1, kind: output, shape index: {}]  }
   0x1   :  { %v101_v0 = vld [vmem:[%s207_s0 + $0xf] sm:$0x1]   ;;  %v103_v1 = vld [vmem:[%s207_s0 + $0xd] sm:$0x1]   ;;  %v102_v2 = vld [vmem:[%s207_s0 + $0xe] sm:$0x1]  }
   0x2   :  { %7 = vrot.lane.b32.xlu0 %v101_v0, %s131_s10  ;;  %19 = vrot.lane.b32.xlu1 %v103_v1, %s132_s11  ;;  %v104_v3 = vld [vmem:[%s207_s0 + $0xc] sm:$0x1]   ;;  %s133_s16 = smov 112   ;;  %s134_s17 = smov 96   ;;  %v105_v4 = vld [vmem:[%s207_s0 + $0xb] sm:$0x1]  }
   0x3   :  { %v106_v5 = vld [vmem:[%s207_s0 + $0xa] sm:$0x1]   ;;  %v2_v6 = vld [vmem:[%s207_s0] sm:$0x1]   ;;  %s135_s24 = smov 88   ;;  %s136_s25 = smov 80  }
   0x4   :  { %4 = vst.msk [vmem:[#allocation0] sm:$0x1] %vm3_vm0, %v2_v6   ;;  %v107_v7 = vld [vmem:[%s207_s0 + $0x9] sm:$0x1]   ;;  %v108_v8 = vld [vmem:[%s207_s0 + $0x8] sm:$0x1]  }
   0x5   :  { %s137_s30 = smov 72   ;;  %s138_s2 = smov 64   ;;  %v109_v9 = vld [vmem:[%s207_s0 + $0x7] sm:$0x1]   ;;  %v110_v10 = vld [vmem:[%s207_s0 + $0x6] sm:$0x1]  }
   0x6   :  { %13 = vrot.lane.b32.xlu0 %v102_v2, %s133_s16  ;;  %25 = vrot.lane.b32.xlu1 %v104_v3, %s134_s17  ;;  %s139_s7 = smov 56   ;;  %s140_s8 = smov 48   ;;  %v111_v11 = vld [vmem:[%s207_s0 + $0x5] sm:$0x1]   ;;  %v112_v12 = vld [vmem:[%s207_s0 + $0x4] sm:$0x1]  }
   0x7   :  { %s141_s13 = smov 40   ;;  %s142_s14 = smov 32   ;;  %v113_v13 = vld [vmem:[%s207_s0 + $0x3] sm:$0x1]   ;;  %v114_v14 = vld [vmem:[%s207_s0 + $0x2] sm:$0x1]  }
   0x8   :  { %s143_s19 = smov 24   ;;  %s144_s20 = smov 16   ;;  %v115_v15 = vld [vmem:[%s207_s0 + $0x1] sm:$0x1]   ;;  %vm27_vm4 = vcmask 851712   ;;  %vm33_vm5 = vcmask 786112  }
   0x9   :  { %s145_s0 = smov 8   ;;  %vm39_vm6 = vcmask 720512   ;;  %vm45_vm7 = vcmask 654912   ;;  %vm51_vm8 = vcmask 589312   ;;  %vm57_vm9 = vcmask 523712  }
   0xa   :  { %31 = vrot.lane.b32.xlu0 %v105_v4, %s135_s24  ;;  %37 = vrot.lane.b32.xlu1 %v106_v5, %s136_s25  ;;  %vm63_vm10 = vcmask 458112   ;;  %vm69_vm11 = vcmask 392512   ;;  %vm75_vm12 = vcmask 326912   ;;  %vm81_vm13 = vcmask 261312  }
   0xb   :  { %vm87_vm14 = vcmask 195712   ;;  %vm93_vm15 = vcmask 130112  }
   0xe   :  { %43 = vrot.lane.b32.xlu0 %v107_v7, %s137_s30  ;;  %49 = vrot.lane.b32.xlu1 %v108_v8, %s138_s2 }
  0x12   :  { %55 = vrot.lane.b32.xlu0 %v109_v9, %s139_s7  ;;  %61 = vrot.lane.b32.xlu1 %v110_v10, %s140_s8 }
  0x16   :  { %67 = vrot.lane.b32.xlu0 %v111_v11, %s141_s13  ;;  %73 = vrot.lane.b32.xlu1 %v112_v12, %s142_s14 }
  0x1a   :  { %79 = vrot.lane.b32.xlu0 %v113_v13, %s143_s19  ;;  %85 = vrot.lane.b32.xlu1 %v114_v14, %s144_s20 }
  0x1e   :  { %91 = vrot.lane.b32.xlu0 %v115_v15, %s145_s0 }
  0x74   :  { %v8_v16 = vpop.permute.xlu0 %7   ;;  %v20_v17 = vpop.permute.xlu1 %19  }
  0x75   :  { %10 = vst.msk [vmem:[#allocation0] sm:$0x1] %vm9_vm1, %v8_v16  }
  0x78   :  { %v14_v18 = vpop.permute.xlu0 %13   ;;  %v26_v19 = vpop.permute.xlu1 %25  }
  0x79   :  { %16 = vst.msk [vmem:[#allocation0] sm:$0x1] %vm15_vm2, %v14_v18  }
  0x7a   :  { %22 = vst.msk [vmem:[#allocation0] sm:$0x1] %vm21_vm3, %v20_v17  }
  0x7b   :  { %28 = vst.msk [vmem:[#allocation0] sm:$0x1] %vm27_vm4, %v26_v19  }
  0x7c   :  { %v32_v20 = vpop.permute.xlu0 %31   ;;  %v38_v21 = vpop.permute.xlu1 %37  }
  0x7d   :  { %34 = vst.msk [vmem:[#allocation0] sm:$0x1] %vm33_vm5, %v32_v20  }
  0x7e   :  { %40 = vst.msk [vmem:[#allocation0] sm:$0x1] %vm39_vm6, %v38_v21  }
  0x80   :  { %v44_v22 = vpop.permute.xlu0 %43   ;;  %v50_v23 = vpop.permute.xlu1 %49  }
  0x81   :  { %46 = vst.msk [vmem:[#allocation0] sm:$0x1] %vm45_vm7, %v44_v22  }
  0x82   :  { %52 = vst.msk [vmem:[#allocation0] sm:$0x1] %vm51_vm8, %v50_v23  }
  0x84   :  { %v56_v24 = vpop.permute.xlu0 %55   ;;  %v62_v25 = vpop.permute.xlu1 %61  }
  0x85   :  { %58 = vst.msk [vmem:[#allocation0] sm:$0x1] %vm57_vm9, %v56_v24  }
  0x86   :  { %64 = vst.msk [vmem:[#allocation0] sm:$0x1] %vm63_vm10, %v62_v25  }
  0x88   :  { %v68_v26 = vpop.permute.xlu0 %67   ;;  %v74_v27 = vpop.permute.xlu1 %73  }
  0x89   :  { %70 = vst.msk [vmem:[#allocation0] sm:$0x1] %vm69_vm11, %v68_v26  }
  0x8a   :  { %76 = vst.msk [vmem:[#allocation0] sm:$0x1] %vm75_vm12, %v74_v27  }
  0x8c   :  { %v80_v28 = vpop.permute.xlu0 %79   ;;  %v86_v29 = vpop.permute.xlu1 %85  }
  0x8d   :  { %82 = vst.msk [vmem:[#allocation0] sm:$0x1] %vm81_vm13, %v80_v28  }
  0x8e   :  { %88 = vst.msk [vmem:[#allocation0] sm:$0x1] %vm87_vm14, %v86_v29  }
  0x90   :  { %v92_v30 = vpop.permute.xlu0 %91  }
  0x91   :  { %94 = vst.msk [vmem:[#allocation0] sm:$0x1] %vm93_vm15, %v92_v30  }
  0x98   :  { %v98_v31 = vld [vmem:[#allocation0] sm:$0x1] }
  0x99   :  { %100 = vst [vmem:[%s208_s1] sm:$0x1] %v98_v31 }

// kernel: resnet_block.1
= control target key start
LH: loop header
LB: loop body
LE: loop exit
PB: predicated region body
PF: predicated region fallthrough
CT: control target
= control target key end

     0   :  { %v29_v43 = vlaneseq  ;;  %s1522_s1 = inlined_call_operand.vmem [shape: bf16[3,128,128], index: 1, kind: input, shape index: {}]   ;;  %s1523_s0 = inlined_call_operand.vmem [shape: bf16[32,128], index: 0, kind: input, shape index: {}]   ;;  %s1524_s3 = inlined_call_operand.vmem [shape: bf16[3,128,128], index: 3, kind: input, shape index: {}]   ;;  %s1525_s2 = inlined_call_operand.vmem [shape: f32[1,128], index: 2, kind: input, shape index: {}]   ;;  %s1526_s4 = inlined_call_operand.vmem [shape: f32[1,128], index: 4, kind: input, shape index: {}]   ;;  %s1527_s5 = inlined_call_operand.vmem [shape: f32[32,128], index: 5, kind: output, shape index: {}]  }
   0x1   :  { %v1182_v0 = vld [vmem:[%s1522_s1] sm:$0xff]   ;;  %v1183_v1 = vld [vmem:[%s1522_s1 + $0x8] sm:$0xff]   ;;  %v1184_v2 = vld [vmem:[%s1522_s1 + $0x10] sm:$0xff]  }
   0x2   :  { %1062 = vmatprep.subr.bf16.mxu0 %v1182_v0  ;;  %v1185_v3 = vld [vmem:[%s1522_s1 + $0x18] sm:$0xff]   ;;  %v1190_v4 = vld [vmem:[%s1522_s1 + $0x80] sm:$0xff]   ;;  %v1194_v6 = vld [vmem:[%s1522_s1 + $0x88] sm:$0xff]   ;;  %v1406_v45 = vshrl.u32 %v29_v43, 7 }
   0x3   :  { %1063 = vmatpush3.bf16.msra.mxu0 %v1182_v0  ;;  %v1282_v5 = vld [vmem:[%s1523_s0] sm:$0xff]   ;;  %1082 = vmatprep.subr.bf16.mxu1 %v1190_v4  ;;  %v1196_v8 = vld [vmem:[%s1522_s1 + $0x90] sm:$0xff]   ;;  %v1187_v9 = vld [vmem:[%s1522_s1 + $0x28] sm:$0xff]  }
   0x4   :  { %1064 = vmatprep.subr.bf16.mxu0 %v1183_v1  ;;  %1083 = vmatpush3.bf16.msra.mxu1 %v1190_v4  ;;  %v1186_v7 = vld [vmem:[%s1522_s1 + $0x20] sm:$0xff]   ;;  %v1198_v10 = vld [vmem:[%s1522_s1 + $0x98] sm:$0xff]   ;;  %v1188_v11 = vld [vmem:[%s1522_s1 + $0x30] sm:$0xff]   ;;  %vm454_vm0 = vcmp.lt.s32.totalorder %v1406_v45, 1  ;;  %vm471_vm1 = vcmp.lt.s32.totalorder %v1406_v45, 7 }
   0x5   :  { %1078 = vmatprep.mubr.bf16.mxu0 %v1282_v5  ;;  %1084 = vmatprep.subr.bf16.mxu1 %v1194_v6  ;;  %v1200_v12 = vld [vmem:[%s1522_s1 + $0xa0] sm:$0xff]   ;;  %v1189_v13 = vld [vmem:[%s1522_s1 + $0x38] sm:$0xff]   ;;  %v1202_v14 = vld [vmem:[%s1522_s1 + $0xa8] sm:$0xff]  }
   0x6   :  { %1098 = vmatprep.mubr.bf16.mxu1 %v1282_v5  ;;  %v1316_v15 = vld [vmem:[%s1523_s0 + $0x8] sm:$0xff]   ;;  %v1193_v16 = vld [vmem:[%s1522_s1 + $0x40] sm:$0xff]   ;;  %v1204_v17 = vld [vmem:[%s1522_s1 + $0xb0] sm:$0xff]  }
   0x7   :  { %1065 = vmatpush3.bf16.msra.mxu0 %v1183_v1  ;;  %v1195_v18 = vld [vmem:[%s1522_s1 + $0x48] sm:$0xff]   ;;  %v1206_v19 = vld [vmem:[%s1522_s1 + $0xb8] sm:$0xff]   ;;  %v1197_v20 = vld [vmem:[%s1522_s1 + $0x50] sm:$0xff]  }
   0x8   :  { %1066 = vmatprep.subr.bf16.mxu0 %v1184_v2  ;;  %1085 = vmatpush3.bf16.msra.mxu1 %v1194_v6  ;;  %v1199_v21 = vld [vmem:[%s1522_s1 + $0x58] sm:$0xff]   ;;  %v1201_v22 = vld [vmem:[%s1522_s1 + $0x60] sm:$0xff]   ;;  %v1203_v23 = vld [vmem:[%s1522_s1 + $0x68] sm:$0xff]   ;;  %v32_v6 = vadd.s32 16, %v1406_v45 }
   0x9   :  { %1086 = vmatprep.subr.bf16.mxu1 %v1196_v8  ;;  %v1205_v24 = vld [vmem:[%s1522_s1 + $0x70] sm:$0xff]   ;;  %v1207_v25 = vld [vmem:[%s1522_s1 + $0x78] sm:$0xff]   ;;  %v1208_v26 = vld [vmem:[%s1524_s3] sm:$0xff]  }
   0xa   :  { %v1209_v27 = vld [vmem:[%s1524_s3 + $0x80] sm:$0xff]   ;;  %v1210_v28 = vld [vmem:[%s1524_s3 + $0x8] sm:$0xff]   ;;  %v1212_v30 = vld [vmem:[%s1524_s3 + $0x10] sm:$0xff]  }
   0xb   :  { %1067 = vmatpush3.bf16.msra.mxu0 %v1184_v2  ;;  %v1211_v29 = vld [vmem:[%s1524_s3 + $0x88] sm:$0xff]   ;;  %v1213_v31 = vld [vmem:[%s1524_s3 + $0x90] sm:$0xff]   ;;  %v1214_v32 = vld [vmem:[%s1524_s3 + $0x18] sm:$0xff]  }
   0xc   :  { %1068 = vmatprep.subr.bf16.mxu0 %v1185_v3  ;;  %1087 = vmatpush3.bf16.msra.mxu1 %v1196_v8  ;;  %v1215_v33 = vld [vmem:[%s1524_s3 + $0x98] sm:$0xff]   ;;  %v1216_v34 = vld [vmem:[%s1524_s3 + $0x20] sm:$0xff]   ;;  %v1218_v36 = vld [vmem:[%s1524_s3 + $0x28] sm:$0xff]   ;;  %v33_v8 = vadd.s32 24, %v1406_v45 }
   0xd   :  { %1088 = vmatprep.subr.bf16.mxu1 %v1198_v10  ;;  %v1217_v35 = vld [vmem:[%s1524_s3 + $0xa0] sm:$0xff]   ;;  %v1219_v37 = vld [vmem:[%s1524_s3 + $0xa8] sm:$0xff]   ;;  %v1220_v38 = vld [vmem:[%s1524_s3 + $0x30] sm:$0xff]  }
   0xe   :  { %v1221_v39 = vld [vmem:[%s1524_s3 + $0xb0] sm:$0xff]   ;;  %v1222_v40 = vld [vmem:[%s1524_s3 + $0x38] sm:$0xff]   ;;  %v1403_v42 = vld [vmem:[%s1524_s3 + $0x40] sm:$0xff]  }
   0xf   :  { %1069 = vmatpush3.bf16.msra.mxu0 %v1185_v3  ;;  %v1223_v41 = vld [vmem:[%s1524_s3 + $0xb8] sm:$0xff]  }
  0x10   :  { %1070 = vmatprep.subr.bf16.mxu0 %v1186_v7  ;;  %1089 = vmatpush3.bf16.msra.mxu1 %v1198_v10  ;;  %v31_v10 = vadd.s32 8, %v1406_v45 }
  0x11   :  { %1090 = vmatprep.subr.bf16.mxu1 %v1200_v12 }
  0x13   :  { %1071 = vmatpush3.bf16.msra.mxu0 %v1186_v7  ;;  %v52_v7 = vand.u32 15, %v32_v6 }
  0x14   :  { %1072 = vmatprep.subr.bf16.mxu0 %v1187_v9  ;;  %1091 = vmatpush3.bf16.msra.mxu1 %v1200_v12  ;;  %v26_v12 = vunpack.c.h.bf16 %v1282_v5 }
  0x15   :  { %1092 = vmatprep.subr.bf16.mxu1 %v1202_v14  ;;  %vm1433_vm2 = vcmp.ne.s32.totalorder %v52_v7, 0 }
  0x17   :  { %1073 = vmatpush3.bf16.msra.mxu0 %v1187_v9  ;;  %v38_v9 = vand.u32 15, %v1406_v45 }
  0x18   :  { %1074 = vmatprep.subr.bf16.mxu0 %v1188_v11  ;;  %1093 = vmatpush3.bf16.msra.mxu1 %v1202_v14 }
  0x19   :  { %1094 = vmatprep.subr.bf16.mxu1 %v1204_v17  ;;  %vm1437_vm3 = vcmp.ne.s32.totalorder %v38_v9, 0 }
  0x1b   :  { %1075 = vmatpush3.bf16.msra.mxu0 %v1188_v11  ;;  %v936_v11 = vld [vmem:[%s1525_s2] ss:$0 sm:$0xff] }
  0x1c   :  { %1076 = vmatprep.subr.bf16.mxu0 %v1189_v13  ;;  %1095 = vmatpush3.bf16.msra.mxu1 %v1204_v17  ;;  %v45_v17 = vand.u32 15, %v31_v10 }
  0x1d   :  { %1096 = vmatprep.subr.bf16.mxu1 %v1206_v19 }
  0x1e   :  { %vm1449_vm5 = vcmp.ne.s32.totalorder %v45_v17, 15  ;;  %v993_v17 = vld [vmem:[%s1526_s4] ss:$0 sm:$0xff] }
  0x1f   :  { %1077 = vmatpush3.bf16.msra.mxu0 %v1189_v13  ;;  %v59_v13 = vand.u32 15, %v33_v8 }
  0x20   :  { %1102 = vmatprep.subr.bf16.mxu0 %v1193_v16  ;;  %1097 = vmatpush3.bf16.msra.mxu1 %v1206_v19 }
  0x21   :  { %1122 = vmatprep.subr.bf16.mxu1 %v1208_v26  ;;  %vm1445_vm4 = vcmp.ne.s32.totalorder %v59_v13, 15 }
  0x22   :  { %1079 = vmatmul.mubr.bf16.vlgmr.msra.gmra.mrb[0].mxu0 %v1316_v15 }
  0x23   :  { %1103 = vmatpush3.bf16.msra.mxu0 %v1193_v16  ;;  %1118 = vmatprep.mubr.bf16.mxu0 %v1282_v5 }
  0x24   :  { %1104 = vmatprep.subr.bf16.mxu0 %v1195_v18  ;;  %1099 = vmatmul.mubr.bf16.vlgmr.msra.gmra.mrb[0].mxu1 %v1316_v15 }
  0x25   :  { %1123 = vmatpush3.bf16.msra.mxu1 %v1208_v26 }
  0x26   :  { %1124 = vmatprep.subr.bf16.mxu1 %v1210_v28 }
  0x27   :  { %1105 = vmatpush3.bf16.msra.mxu0 %v1195_v18 }
  0x28   :  { %1106 = vmatprep.subr.bf16.mxu0 %v1197_v20 }
  0x29   :  { %1125 = vmatpush3.bf16.msra.mxu1 %v1210_v28 }
  0x2a   :  { %1126 = vmatprep.subr.bf16.mxu1 %v1212_v30 }
  0x2b   :  { %1107 = vmatpush3.bf16.msra.mxu0 %v1197_v20 }
  0x2c   :  { %1108 = vmatprep.subr.bf16.mxu0 %v1199_v21 }
  0x2d   :  { %1127 = vmatpush3.bf16.msra.mxu1 %v1212_v30 }
  0x2e   :  { %1128 = vmatprep.subr.bf16.mxu1 %v1214_v32 }
  0x2f   :  { %1109 = vmatpush3.bf16.msra.mxu0 %v1199_v21 }
  0x30   :  { %1110 = vmatprep.subr.bf16.mxu0 %v1201_v22 }
  0x31   :  { %1129 = vmatpush3.bf16.msra.mxu1 %v1214_v32 }
  0x32   :  { %1130 = vmatprep.subr.bf16.mxu1 %v1216_v34 }
  0x33   :  { %1111 = vmatpush3.bf16.msra.mxu0 %v1201_v22 }
  0x34   :  { %1112 = vmatprep.subr.bf16.mxu0 %v1203_v23 }
  0x35   :  { %1131 = vmatpush3.bf16.msra.mxu1 %v1216_v34 }
  0x36   :  { %1132 = vmatprep.subr.bf16.mxu1 %v1218_v36 }
  0x37   :  { %1113 = vmatpush3.bf16.msra.mxu0 %v1203_v23 }
  0x38   :  { %1114 = vmatprep.subr.bf16.mxu0 %v1205_v24 }
  0x39   :  { %1133 = vmatpush3.bf16.msra.mxu1 %v1218_v36 }
  0x3a   :  { %1134 = vmatprep.subr.bf16.mxu1 %v1220_v38 }
  0x3b   :  { %1115 = vmatpush3.bf16.msra.mxu0 %v1205_v24 }
  0x3c   :  { %1116 = vmatprep.subr.bf16.mxu0 %v1207_v25 }
  0x3d   :  { %1135 = vmatpush3.bf16.msra.mxu1 %v1220_v38 }
  0x3e   :  { %1136 = vmatprep.subr.bf16.mxu1 %v1222_v40 }
  0x3f   :  { %1117 = vmatpush3.bf16.msra.mxu0 %v1207_v25 }
  0x40   :  { %1142 = vmatprep.subr.bf16.mxu0 %v1209_v27 }
  0x41   :  { %1137 = vmatpush3.bf16.msra.mxu1 %v1222_v40 }
  0x42   :  { %1119 = vmatmul.mubr.bf16.vlgmr.msra.gmra.mrb[4].mxu0 %v1316_v15  ;;  %1162 = vmatprep.subr.bf16.mxu1 %v1403_v42 }
  0x43   :  { %1143 = vmatpush3.bf16.msra.mxu0 %v1209_v27 }
  0x44   :  { %1144 = vmatprep.subr.bf16.mxu0 %v1211_v29 }
  0x47   :  { %1145 = vmatpush3.bf16.msra.mxu0 %v1211_v29 }
  0x48   :  { %1146 = vmatprep.subr.bf16.mxu0 %v1213_v31 }
  0x4b   :  { %1147 = vmatpush3.bf16.msra.mxu0 %v1213_v31 }
  0x4c   :  { %1148 = vmatprep.subr.bf16.mxu0 %v1215_v33 }
  0x4f   :  { %1149 = vmatpush3.bf16.msra.mxu0 %v1215_v33 }
  0x50   :  { %1150 = vmatprep.subr.bf16.mxu0 %v1217_v35 }
  0x53   :  { %1151 = vmatpush3.bf16.msra.mxu0 %v1217_v35 }
  0x54   :  { %1152 = vmatprep.subr.bf16.mxu0 %v1219_v37 }
  0x57   :  { %1153 = vmatpush3.bf16.msra.mxu0 %v1219_v37 }
  0x58   :  { %1154 = vmatprep.subr.bf16.mxu0 %v1221_v39 }
  0x5b   :  { %1155 = vmatpush3.bf16.msra.mxu0 %v1221_v39 }
  0x5c   :  { %1156 = vmatprep.subr.bf16.mxu0 %v1223_v41 }
  0x5f   :  { %1157 = vmatpush3.bf16.msra.mxu0 %v1223_v41 }
  0xf5   :  { %v1080_v44 = vpop.f32.mrb[0].mxu0 }
  0xf6   :  { %v452_v46 = vrot.slane %v1080_v44, 7  ;;  %v200_v47 = vpop.f32.mrb[1].mxu0 }
  0xf7   :  { %v450_v48 = vrot.slane %v200_v47, 7  ;;  %v1081_v49 = vpop.f32.mrb[2].mxu0  ;;  %v1100_v57 = vpop.f32.mrb[0].mxu1  ;;  %v1225_v47 = vld [vmem:[%s1524_s3 + $0x48] sm:$0xff]  }
  0xf8   :  { %v453_v50 = vrot.slane %v1081_v49, 7  ;;  %v203_v51 = vpop.f32.mrb[3].mxu0  ;;  %v469_v58 = vrot.slane %v1100_v57, 1  ;;  %v331_v59 = vpop.f32.mrb[1].mxu1  ;;  %v1227_v49 = vld [vmem:[%s1524_s3 + $0x58] sm:$0xff]  }
  0xf9   :  { %v451_v52 = vrot.slane %v203_v51, 7  ;;  %v467_v60 = vrot.slane %v331_v59, 1  ;;  %v1101_v61 = vpop.f32.mrb[2].mxu1  ;;  %v1230_v51 = vld [vmem:[%s1524_s3 + $0x70] sm:$0xff]  }
  0xfa   :  { %v458_v53 = vsel %vm454_vm0, %v453_v50, %v450_v48  ;;  %v455_v54 = vsel %vm454_vm0, %v452_v46, %v453_v50  ;;  %v470_v62 = vrot.slane %v1101_v61, 1  ;;  %v334_v63 = vpop.f32.mrb[3].mxu1  ;;  %v1228_v50 = vld [vmem:[%s1524_s3 + $0x60] sm:$0xff]  }
  0xfb   :  { %v456_v55 = vsel %vm454_vm0, %v451_v52, %v452_v46  ;;  %v457_v56 = vsel %vm454_vm0, %v450_v48, %v451_v52  ;;  %v468_v0 = vrot.slane %v334_v63, 1  ;;  %v459_v24 = vsel %vm1437_vm3, %v458_v53, 0.0  ;;  %v1226_v48 = vld [vmem:[%s1524_s3 + $0x50] sm:$0xff]   ;;  %v1231_v52 = vld [vmem:[%s1524_s3 + $0x78] sm:$0xff]  }
  0xfc   :  { %v472_v1 = vsel %vm471_vm1, %v469_v58, %v470_v62  ;;  %v475_v2 = vsel %vm471_vm1, %v470_v62, %v467_v60  ;;  %v461_v20 = vsel %vm1433_vm2, %v456_v55, 0.0 }
  0xfd   :  { %v473_v3 = vsel %vm471_vm1, %v468_v0, %v469_v58  ;;  %v474_v4 = vsel %vm471_vm1, %v467_v60, %v468_v0  ;;  %v479_v34 = vsel %vm1445_vm4, %v475_v2, 0.0 }
  0xfe   :  { %v477_v37 = vsel %vm1449_vm5, %v473_v3, 0.0 }
 0x115   :  { %v1120_v14 = vpop.f32.mrb[4].mxu0 }
 0x116   :  { %v444_v18 = vadd.f32 %v1120_v14, %v936_v11  ;;  %v435_v19 = vpop.f32.mrb[5].mxu0 }
 0x117   :  { %v436_v21 = vadd.f32 %v936_v11, %v435_v19  ;;  %v1121_v22 = vpop.f32.mrb[6].mxu0 }
 0x118   :  { %v465_v23 = vadd.f32 %v461_v20, %v444_v18  ;;  %v447_v26 = vadd.f32 %v1121_v22, %v936_v11  ;;  %v438_v27 = vpop.f32.mrb[7].mxu0 }
 0x119   :  { %v463_v28 = vadd.f32 %v459_v24, %v436_v21  ;;  %v439_v30 = vadd.f32 %v936_v11, %v438_v27  ;;  %v27_v24 = vunpack.c.l.bf16 %v1316_v15 }
 0x11a   :  { %v482_v31 = vadd.f32 %v472_v1, %v465_v23  ;;  %v466_v32 = vadd.f32 %v455_v54, %v447_v26 }
 0x11b   :  { %v480_v33 = vadd.f32 %v474_v4, %v463_v28  ;;  %v464_v35 = vadd.f32 %v457_v56, %v439_v30  ;;  %v25_v30 = vunpack.c.l.bf16 %v1282_v5 }
 0x11c   :  { %v483_v36 = vadd.f32 %v479_v34, %v466_v32  ;;  %v486_v39 = vmax.f32 %v482_v31, 0.0 }
 0x11d   :  { %v481_v38 = vadd.f32 %v477_v37, %v464_v35  ;;  %v484_v41 = vmax.f32 %v480_v33, 0.0  ;;  %v28_v33 = vunpack.c.h.bf16 %v1316_v15 }
 0x11e   :  { %v487_v40 = vmax.f32 %v483_v36, 0.0 }
 0x11f   :  { %v485_v43 = vmax.f32 %v481_v38, 0.0 }
 0x120   :  { %v489_v44 = vpack.c.bf16 %v487_v40, %v486_v39 }
 0x121   :  { %v488_v46 = vpack.c.bf16 %v485_v43, %v484_v41 }
 0x123   :  { %1138 = vmatprep.mubr.bf16.mxu1 %v488_v46  ;;  %1158 = vmatprep.mubr.bf16.mxu0 %v488_v46 }
 0x124   :  { %1139 = vmatmul.mubr.bf16.vlgmr.msra.gmra.mrb[4].mxu1 %v489_v44  ;;  %1159 = vmatmul.mubr.bf16.vlgmr.msra.gmra.mrb[8].mxu0 %v489_v44 }
 0x125   :  { %1163 = vmatpush3.bf16.msra.mxu1 %v1403_v42  ;;  %1178 = vmatprep.mubr.bf16.mxu1 %v488_v46  ;;  %v1229_v42 = vld [vmem:[%s1524_s3 + $0x68] sm:$0xff]  }
 0x126   :  { %1164 = vmatprep.subr.bf16.mxu1 %v1225_v47 }
 0x129   :  { %1165 = vmatpush3.bf16.msra.mxu1 %v1225_v47 }
 0x12a   :  { %1166 = vmatprep.subr.bf16.mxu1 %v1226_v48 }
 0x12d   :  { %1167 = vmatpush3.bf16.msra.mxu1 %v1226_v48 }
 0x12e   :  { %1168 = vmatprep.subr.bf16.mxu1 %v1227_v49 }
 0x131   :  { %1169 = vmatpush3.bf16.msra.mxu1 %v1227_v49 }
 0x132   :  { %1170 = vmatprep.subr.bf16.mxu1 %v1228_v50 }
 0x135   :  { %1171 = vmatpush3.bf16.msra.mxu1 %v1228_v50 }
 0x136   :  { %1172 = vmatprep.subr.bf16.mxu1 %v1229_v42 }
 0x139   :  { %1173 = vmatpush3.bf16.msra.mxu1 %v1229_v42 }
 0x13a   :  { %1174 = vmatprep.subr.bf16.mxu1 %v1230_v51 }
 0x13d   :  { %1175 = vmatpush3.bf16.msra.mxu1 %v1230_v51 }
 0x13e   :  { %1176 = vmatprep.subr.bf16.mxu1 %v1231_v52 }
 0x141   :  { %1177 = vmatpush3.bf16.msra.mxu1 %v1231_v52 }
 0x144   :  { %1179 = vmatmul.mubr.bf16.vlgmr.msra.gmra.mrb[8].mxu1 %v489_v44 }
 0x1f7   :  { %v1140_v53 = vpop.f32.mrb[4].mxu1  ;;  %v1160_v54 = vpop.f32.mrb[8].mxu0 }
 0x1f8   :  { %v588_v55 = vpop.f32.mrb[5].mxu1  ;;  %v719_v56 = vpop.f32.mrb[9].mxu0  ;;  %v840_v61 = vrot.slane %v1140_v53, 7  ;;  %v856_v62 = vrot.slane %v1160_v54, 1 }
 0x1f9   :  { %v838_v57 = vrot.slane %v588_v55, 7  ;;  %v854_v58 = vrot.slane %v719_v56, 1  ;;  %v1141_v59 = vpop.f32.mrb[6].mxu1  ;;  %v1161_v60 = vpop.f32.mrb[10].mxu0 }
 0x1fa   :  { %v841_v63 = vrot.slane %v1141_v59, 7  ;;  %v857_v0 = vrot.slane %v1161_v60, 1  ;;  %v591_v1 = vpop.f32.mrb[7].mxu1  ;;  %v722_v2 = vpop.f32.mrb[11].mxu0 }
 0x1fb   :  { %v839_v3 = vrot.slane %v591_v1, 7  ;;  %v855_v4 = vrot.slane %v722_v2, 1 }
 0x1fc   :  { %v858_v6 = vsel %vm471_vm1, %v856_v62, %v857_v0  ;;  %v861_v7 = vsel %vm471_vm1, %v857_v0, %v854_v58  ;;  %v845_v8 = vsel %vm454_vm0, %v841_v63, %v838_v57  ;;  %v842_v9 = vsel %vm454_vm0, %v840_v61, %v841_v63 }
 0x1fd   :  { %v859_v10 = vsel %vm471_vm1, %v855_v4, %v856_v62  ;;  %v860_v11 = vsel %vm471_vm1, %v854_v58, %v855_v4  ;;  %v843_v13 = vsel %vm454_vm0, %v839_v3, %v840_v61  ;;  %v844_v14 = vsel %vm454_vm0, %v838_v57, %v839_v3 }
 0x1fe   :  { %v848_v21 = vsel %vm1433_vm2, %v843_v13, 0.0  ;;  %v846_v27 = vsel %vm1437_vm3, %v845_v8, 0.0  ;;  %v865_v37 = vsel %vm1445_vm4, %v861_v7, 0.0  ;;  %v863_v16 = vsel %vm1449_vm5, %v859_v10, 0.0 }
 0x217   :  { %v1180_v18 = vpop.f32.mrb[8].mxu1 }
 0x218   :  { %v832_v19 = vadd.f32 %v1180_v18, %v993_v17  ;;  %v823_v20 = vpop.f32.mrb[9].mxu1 }
 0x219   :  { %v824_v22 = vadd.f32 %v993_v17, %v823_v20  ;;  %v1181_v23 = vpop.f32.mrb[10].mxu1 }
 0x21a   :  { %v852_v26 = vadd.f32 %v848_v21, %v832_v19  ;;  %v835_v45 = vadd.f32 %v1181_v23, %v993_v17  ;;  %v826_v28 = vpop.f32.mrb[11].mxu1 }
 0x21b   :  { %v850_v31 = vadd.f32 %v846_v27, %v824_v22  ;;  %v827_v32 = vadd.f32 %v993_v17, %v826_v28 }
 0x21c   :  { %v868_v34 = vadd.f32 %v858_v6, %v852_v26  ;;  %v853_v35 = vadd.f32 %v842_v9, %v835_v45 }
 0x21d   :  { %v866_v36 = vadd.f32 %v860_v11, %v850_v31  ;;  %v851_v38 = vadd.f32 %v844_v14, %v827_v32 }
 0x21e   :  { %v872_v39 = vadd.f32 %v868_v34, %v27_v24  ;;  %v869_v40 = vadd.f32 %v865_v37, %v853_v35 }
 0x21f   :  { %v870_v41 = vadd.f32 %v866_v36, %v25_v30  ;;  %v867_v43 = vadd.f32 %v863_v16, %v851_v38 }
 0x220   :  { %v876_v44 = vmax.f32 %v872_v39, 0.0  ;;  %v873_v46 = vadd.f32 %v869_v40, %v28_v33 }
 0x221   :  { %v874_v47 = vmax.f32 %v870_v41, 0.0  ;;  %v871_v15 = vadd.f32 %v867_v43, %v26_v12 }
 0x222   :  { %880 = vst [vmem:[%s1527_s5 + $0x10] sm:$0xff] %v876_v44  ;;  %v877_v5 = vmax.f32 %v873_v46, 0.0 }
 0x223   :  { %878 = vst [vmem:[%s1527_s5] sm:$0xff] %v874_v47  ;;  %v875_v25 = vmax.f32 %v871_v15, 0.0 }
 0x224   :  { %881 = vst [vmem:[%s1527_s5 + $0x18] sm:$0xff] %v877_v5 }
 0x225   :  { %879 = vst [vmem:[%s1527_s5 + $0x8] sm:$0xff] %v875_v25 }

</bundles_post_ra>
